<compile_context>
chip_gen: v7x
topology: tpu7x:2x2x1
jax: 0.10.0
libtpu: 0.0.40
codegen_flags: <defaults>
</compile_context>

<pallas_src>
import functools

import jax
import jax.numpy as jnp
from jax.experimental import pallas as pl
from jax.experimental.pallas import tpu as pltpu

LANE = 128
SUBLANE = 8


def _round_up(n, m):
    return ((n + m - 1) // m) * m


def mlp_kernel(x_ref, w0_ref, b0_ref, w1_ref, b1_ref, w2_ref, b2_ref, o_ref):
    """One batch tile: y = fc2(clamp01(fc1(clamp01(fc0(x)))))."""
    mm = w0_ref.dtype  # matmul dtype (bf16); accumulation/epilogue stay f32

    # fc0 + ClampedReLU   (clamp(relu(x), 0, 1) == clip(x, 0, 1))
    h = jnp.dot(x_ref[...], w0_ref[...], preferred_element_type=jnp.float32)
    h = jnp.clip(h + b0_ref[...], 0.0, 1.0)

    # fc1 + ClampedReLU
    h = jnp.dot(h.astype(mm), w1_ref[...], preferred_element_type=jnp.float32)
    h = jnp.clip(h + b1_ref[...], 0.0, 1.0)

    # fc2 (no activation)
    y = jnp.dot(h.astype(mm), w2_ref[...], preferred_element_type=jnp.float32)
    o_ref[...] = (y + b2_ref[...]).astype(o_ref.dtype)


def prepare_params(w0, b0, w1, b1, w2, b2, *, mm_dtype=jnp.bfloat16):
    """One-time conversion of PyTorch-layout params ([out, in] weights) into
    kernel layout: transposed to [in, out], zero-padded to 128 multiples,
    weights cast to the matmul dtype, biases kept f32 as (1, d) rows."""
    d_h, d_in = w0.shape
    d_out = w2.shape[0]
    d_in_p, d_h_p, d_out_p = (_round_up(d, LANE) for d in (d_in, d_h, d_out))

    def pad_w(w, rows, cols):  # [out, in] -> padded [in_p, out_p], mm_dtype
        wt = w.T.astype(mm_dtype)
        return jnp.pad(wt, ((0, rows - wt.shape[0]), (0, cols - wt.shape[1])))

    def pad_b(b, cols):  # [out] -> padded f32 row [1, out_p]
        return jnp.pad(b.astype(jnp.float32), (0, cols - b.shape[0])).reshape(1, cols)

    params = (
        pad_w(w0, d_in_p, d_h_p), pad_b(b0, d_h_p),
        pad_w(w1, d_h_p, d_h_p), pad_b(b1, d_h_p),
        pad_w(w2, d_h_p, d_out_p), pad_b(b2, d_out_p),
    )
    dims = (d_in, d_h, d_out, d_in_p, d_h_p, d_out_p)
    return params, dims


def two_layer_mlp(x, params, dims, *, tile_m=256):
    """x: [B, d_in] (any float dtype); params/dims from prepare_params()."""
    w0p, b0p, w1p, b1p, w2p, b2p = params
    d_in, d_h, d_out, d_in_p, d_h_p, d_out_p = dims
    B = x.shape[0]
    mm_dtype = w0p.dtype
    mm_bytes = jnp.dtype(mm_dtype).itemsize

    # Batch tile: multiple of 8 sublanes, no larger than the (padded) batch.
    tm = _round_up(min(tile_m, _round_up(B, SUBLANE)), SUBLANE)
    b_pad = _round_up(B, tm)

    # Pad batch to a tile multiple, features to lane width; cast to MXU dtype.
    xp = jnp.pad(x.astype(mm_dtype), ((0, b_pad - B), (0, d_in_p - d_in)))

    # Explicit VMEM budget (double-buffered I/O tiles + resident weights/bias
    # + f32 hidden intermediates), with headroom; capped under v7x's 64 MiB.
    budget = (
        2 * tm * d_in_p * mm_bytes                                  # x tiles
        + 2 * tm * d_out_p * 4                                      # y tiles
        + 2 * (d_in_p * d_h_p + d_h_p * d_h_p + d_h_p * d_out_p) * mm_bytes
        + 2 * (2 * d_h_p + d_out_p) * 4                             # biases
        + 2 * tm * d_h_p * 4                                        # hidden f32
    )
    vmem_limit = int(min(48 << 20, max(16 << 20, int(budget * 1.5))))

    resident = lambda shape: pl.BlockSpec(shape, lambda i: (0, 0))

    out = pl.pallas_call(
        mlp_kernel,
        out_shape=jax.ShapeDtypeStruct((b_pad, d_out_p), jnp.float32),
        grid=(b_pad // tm,),
        in_specs=[
            pl.BlockSpec((tm, d_in_p), lambda i: (i, 0)),   # x: tiled over batch
            resident((d_in_p, d_h_p)), resident((1, d_h_p)),
            resident((d_h_p, d_h_p)), resident((1, d_h_p)),
            resident((d_h_p, d_out_p)), resident((1, d_out_p)),
        ],
        out_specs=pl.BlockSpec((tm, d_out_p), lambda i: (i, 0)),
        compiler_params=pltpu.CompilerParams(
            dimension_semantics=("parallel",),
            vmem_limit_bytes=vmem_limit,
        ),
    )(xp, w0p, b0p, w1p, b1p, w2p, b2p)

    return out[:B, :d_out].astype(x.dtype)


def reference_mlp(x, w0, b0, w1, b1, w2, b2, mm_dtype=jnp.bfloat16):
    """Pure-JAX reference with the same precision policy (bf16 matmul inputs,
    f32 accumulation, f32 bias/clip epilogue) in PyTorch weight layout."""
    def lin(a, w, b):
        return jnp.dot(a.astype(mm_dtype), w.T.astype(mm_dtype),
                       preferred_element_type=jnp.float32) + b
    h = jnp.clip(lin(x, w0, b0), 0.0, 1.0)
    h = jnp.clip(lin(h, w1, b1), 0.0, 1.0)
    return lin(h, w2, b2)


if __name__ == "__main__":
    # Shapes consistent with TwoLayerMLP(input_dim=16, hidden_dim=32, output_dim=8)
    B, D_IN, D_H, D_OUT = 8, 16, 32, 8

    key = jax.random.PRNGKey(0)
    k = jax.random.split(key, 7)

    def linear_init(kw, kb, fan_in, fan_out):
        bound = 1.0 / jnp.sqrt(jnp.float32(fan_in))
        w = jax.random.uniform(kw, (fan_out, fan_in), jnp.float32, -bound, bound)
        b = jax.random.uniform(kb, (fan_out,), jnp.float32, -bound, bound)
        return w, b

    x = jax.random.normal(k[0], (B, D_IN), jnp.float32)
    w0, b0 = linear_init(k[1], k[2], D_IN, D_H)
    w1, b1 = linear_init(k[3], k[4], D_H, D_H)
    w2, b2 = linear_init(k[5], k[6], D_H, D_OUT)

    # One-time parameter prep (transpose + pad + bf16 cast) outside the hot path.
    params, dims = prepare_params(w0, b0, w1, b1, w2, b2)
    fwd = jax.jit(functools.partial(two_layer_mlp, params=params, dims=dims))

    out = jax.block_until_ready(fwd(x))

    ref_bf16 = reference_mlp(x, w0, b0, w1, b1, w2, b2)                       # same precision path
    ref_f32 = reference_mlp(x, w0, b0, w1, b1, w2, b2, mm_dtype=jnp.float32)  # sanity check

    assert out.shape == (B, D_OUT)
    assert jnp.allclose(out, ref_bf16, atol=1e-4, rtol=1e-4), float(jnp.max(jnp.abs(out - ref_bf16)))
    assert jnp.allclose(out, ref_f32, atol=5e-2), float(jnp.max(jnp.abs(out - ref_f32)))

    print("KERNEL_OK")
</pallas_src>

<mosaic_0001>
module attributes {stable_mosaic.version = 11 : i64} {
  func.func @mlp_kernel(%arg0: i32, %arg1: memref<8x128xbf16, #tpu.memory_space<vmem>>, %arg2: memref<128x128xbf16, #tpu.memory_space<vmem>>, %arg3: memref<1x128xf32, #tpu.memory_space<vmem>>, %arg4: memref<128x128xbf16, #tpu.memory_space<vmem>>, %arg5: memref<1x128xf32, #tpu.memory_space<vmem>>, %arg6: memref<128x128xbf16, #tpu.memory_space<vmem>>, %arg7: memref<1x128xf32, #tpu.memory_space<vmem>>, %arg8: memref<8x128xf32, #tpu.memory_space<vmem>>) attributes {dimension_semantics = [#tpu.dimension_semantics<parallel>], iteration_bounds = array<i64: 1>, scalar_prefetch = 0 : i64, scratch_operands = 0 : i64, tpu.core_type = #tpu.core_type<tc>, window_params = [{transform_indices = @transform_0, window_bounds = array<i64: 8, 128>}, {pipeline_mode = #tpu.pipeline_mode<synchronous>, transform_indices = @transform_1, window_bounds = array<i64: 128, 128>}, {pipeline_mode = #tpu.pipeline_mode<synchronous>, transform_indices = @transform_2, window_bounds = array<i64: 1, 128>}, {pipeline_mode = #tpu.pipeline_mode<synchronous>, transform_indices = @transform_3, window_bounds = array<i64: 128, 128>}, {pipeline_mode = #tpu.pipeline_mode<synchronous>, transform_indices = @transform_4, window_bounds = array<i64: 1, 128>}, {pipeline_mode = #tpu.pipeline_mode<synchronous>, transform_indices = @transform_5, window_bounds = array<i64: 128, 128>}, {pipeline_mode = #tpu.pipeline_mode<synchronous>, transform_indices = @transform_6, window_bounds = array<i64: 1, 128>}, {transform_indices = @transform_7, window_bounds = array<i64: 8, 128>}]} {
    %c0 = arith.constant 0 : index
    %c0_0 = arith.constant 0 : index
    %0 = vector.load %arg1[%c0, %c0_0] : memref<8x128xbf16, #tpu.memory_space<vmem>>, vector<8x128xbf16>
    %c0_1 = arith.constant 0 : index
    %c0_2 = arith.constant 0 : index
    %1 = vector.load %arg2[%c0_1, %c0_2] : memref<128x128xbf16, #tpu.memory_space<vmem>>, vector<128x128xbf16>
    %cst = arith.constant dense<0.000000e+00> : vector<8x128xf32>
    %2 = tpu.matmul %0, %1, %cst {dimension_numbers = #tpu.dot_dimension_numbers<[1], [0], [0], [1], [0, 0, 1, 1], [], []>} : vector<8x128xbf16>, vector<128x128xbf16>, vector<8x128xf32> -> vector<8x128xf32>
    %c0_3 = arith.constant 0 : index
    %c0_4 = arith.constant 0 : index
    %3 = vector.load %arg3[%c0_3, %c0_4] : memref<1x128xf32, #tpu.memory_space<vmem>>, vector<1x128xf32>
    %4 = vector.broadcast %3 : vector<1x128xf32> to vector<8x128xf32>
    %5 = arith.addf %2, %4 : vector<8x128xf32>
    %cst_5 = arith.constant 0.000000e+00 : f32
    %cst_6 = arith.constant 1.000000e+00 : f32
    %6 = vector.broadcast %cst_5 : f32 to vector<8x128xf32>
    %7 = arith.maximumf %6, %5 : vector<8x128xf32>
    %8 = vector.broadcast %cst_6 : f32 to vector<8x128xf32>
    %9 = arith.minimumf %8, %7 : vector<8x128xf32>
    %10 = arith.truncf %9 : vector<8x128xf32> to vector<8x128xbf16>
    %c0_7 = arith.constant 0 : index
    %c0_8 = arith.constant 0 : index
    %11 = vector.load %arg4[%c0_7, %c0_8] : memref<128x128xbf16, #tpu.memory_space<vmem>>, vector<128x128xbf16>
    %cst_9 = arith.constant dense<0.000000e+00> : vector<8x128xf32>
    %12 = tpu.matmul %10, %11, %cst_9 {dimension_numbers = #tpu.dot_dimension_numbers<[1], [0], [0], [1], [0, 0, 1, 1], [], []>} : vector<8x128xbf16>, vector<128x128xbf16>, vector<8x128xf32> -> vector<8x128xf32>
    %c0_10 = arith.constant 0 : index
    %c0_11 = arith.constant 0 : index
    %13 = vector.load %arg5[%c0_10, %c0_11] : memref<1x128xf32, #tpu.memory_space<vmem>>, vector<1x128xf32>
    %14 = vector.broadcast %13 : vector<1x128xf32> to vector<8x128xf32>
    %15 = arith.addf %12, %14 : vector<8x128xf32>
    %cst_12 = arith.constant 0.000000e+00 : f32
    %cst_13 = arith.constant 1.000000e+00 : f32
    %16 = vector.broadcast %cst_12 : f32 to vector<8x128xf32>
    %17 = arith.maximumf %16, %15 : vector<8x128xf32>
    %18 = vector.broadcast %cst_13 : f32 to vector<8x128xf32>
    %19 = arith.minimumf %18, %17 : vector<8x128xf32>
    %20 = arith.truncf %19 : vector<8x128xf32> to vector<8x128xbf16>
    %c0_14 = arith.constant 0 : index
    %c0_15 = arith.constant 0 : index
    %21 = vector.load %arg6[%c0_14, %c0_15] : memref<128x128xbf16, #tpu.memory_space<vmem>>, vector<128x128xbf16>
    %cst_16 = arith.constant dense<0.000000e+00> : vector<8x128xf32>
    %22 = tpu.matmul %20, %21, %cst_16 {dimension_numbers = #tpu.dot_dimension_numbers<[1], [0], [0], [1], [0, 0, 1, 1], [], []>} : vector<8x128xbf16>, vector<128x128xbf16>, vector<8x128xf32> -> vector<8x128xf32>
    %c0_17 = arith.constant 0 : index
    %c0_18 = arith.constant 0 : index
    %23 = vector.load %arg7[%c0_17, %c0_18] : memref<1x128xf32, #tpu.memory_space<vmem>>, vector<1x128xf32>
    %24 = vector.broadcast %23 : vector<1x128xf32> to vector<8x128xf32>
    %25 = arith.addf %22, %24 : vector<8x128xf32>
    %c0_19 = arith.constant 0 : index
    %c0_20 = arith.constant 0 : index
    %26 = vector.load %arg8[%c0_19, %c0_20] : memref<8x128xf32, #tpu.memory_space<vmem>>, vector<8x128xf32>
    tpu.vector_store %arg8[%c0_19, %c0_20], %25 {strides = array<i32>} : memref<8x128xf32, #tpu.memory_space<vmem>>, vector<8x128xf32>,
    return
  }
  func.func @transform_0(%arg0: i32) -> (i32, i32) {
    %c0_i32 = arith.constant 0 : i32
    %c0_i32_0 = arith.constant 0 : i32
    return %arg0, %c0_i32 : i32, i32
  }
  func.func @transform_1(%arg0: i32) -> (i32, i32) {
    %c0_i32 = arith.constant 0 : i32
    %c0_i32_0 = arith.constant 0 : i32
    %c0_i32_1 = arith.constant 0 : i32
    return %c0_i32, %c0_i32_0 : i32, i32
  }
  func.func @transform_2(%arg0: i32) -> (i32, i32) {
    %c0_i32 = arith.constant 0 : i32
    %c0_i32_0 = arith.constant 0 : i32
    %c0_i32_1 = arith.constant 0 : i32
    return %c0_i32, %c0_i32_0 : i32, i32
  }
  func.func @transform_3(%arg0: i32) -> (i32, i32) {
    %c0_i32 = arith.constant 0 : i32
    %c0_i32_0 = arith.constant 0 : i32
    %c0_i32_1 = arith.constant 0 : i32
    return %c0_i32, %c0_i32_0 : i32, i32
  }
  func.func @transform_4(%arg0: i32) -> (i32, i32) {
    %c0_i32 = arith.constant 0 : i32
    %c0_i32_0 = arith.constant 0 : i32
    %c0_i32_1 = arith.constant 0 : i32
    return %c0_i32, %c0_i32_0 : i32, i32
  }
  func.func @transform_5(%arg0: i32) -> (i32, i32) {
    %c0_i32 = arith.constant 0 : i32
    %c0_i32_0 = arith.constant 0 : i32
    %c0_i32_1 = arith.constant 0 : i32
    return %c0_i32, %c0_i32_0 : i32, i32
  }
  func.func @transform_6(%arg0: i32) -> (i32, i32) {
    %c0_i32 = arith.constant 0 : i32
    %c0_i32_0 = arith.constant 0 : i32
    %c0_i32_1 = arith.constant 0 : i32
    return %c0_i32, %c0_i32_0 : i32, i32
  }
  func.func @transform_7(%arg0: i32) -> (i32, i32) {
    %c0_i32 = arith.constant 0 : i32
    %c0_i32_0 = arith.constant 0 : i32
    return %arg0, %c0_i32 : i32, i32
  }
}

</mosaic_0001>

<bundles_post_ra>
// kernel: two_layer_mlp.1
= control target key start
LH: loop header
LB: loop body
LE: loop exit
PB: predicated region body
PF: predicated region fallthrough
CT: control target
= control target key end

     0   :  { %12 = vsyncpa [#allocation3], 0  ;;  %s820_s0 = inlined_call_operand.vmem [shape: bf16[8,128], index: 0, kind: input, shape index: {}]   ;;  %s821_s1 = inlined_call_operand.hbm [shape: bf16[128,128], index: 1, kind: input, shape index: {}]   ;;  %s822_s2 = inlined_call_operand.vmem [shape: f32[1,128], index: 2, kind: input, shape index: {}]   ;;  %s823_s3 = inlined_call_operand.hbm [shape: bf16[128,128], index: 3, kind: input, shape index: {}]   ;;  %s824_s4 = inlined_call_operand.vmem [shape: f32[1,128], index: 4, kind: input, shape index: {}]   ;;  %s825_s5 = inlined_call_operand.hbm [shape: bf16[128,128], index: 5, kind: input, shape index: {}]   ;;  %s826_s6 = inlined_call_operand.vmem [shape: f32[1,128], index: 6, kind: input, shape index: {}]   ;;  %s827_s7 = inlined_call_operand.hbm [shape: f32[8,128], index: 7, kind: output, shape index: {}]  }
   0x1   :  { %13 = vsyncpa [#allocation6], 0 }
   0x2   :  { %14 = vsyncpa [#allocation4], 0  ;;  %s666_s24 = smov [#allocation5]   ;;  %s667_s26 = smov [#allocation2]  }
   0x3   :  { %s36_s25 = sshll.u32 %s666_s24, 4  ;;  %s22_s27 = sshll.u32 %s667_s26, 4  ;;  %s37_s25 = int_to_ptr.vmem [resolvable:$true] %s36_s25  ;;  %s714_s27 = int_to_ptr.vmem [resolvable:$true] %s22_s27 }
   0x4   :  { %s572_s30 = scalar_lea.hbm %s823_s3, 1024 }
   0x5   :  { %p573_p0 = scmp.ne.s32.totalorder %s823_s3, %s572_s30  ;;  %p576_p1 = scmp.lt.u32.totalorder %s572_s30, %s823_s3 }
   0x7   :  { %p578_p2 = pnand %p576_p1, %p573_p0 }
   0x9   :  { %581 = shalt.err (!%p578_p2)
}
   0xa   :  { %s582_s12 = scalar_lea.vmem %s37_s25, 1024  ;;  %p587_p4 = scmp.lt.s32.totalorder %s37_s25, %s37_s25 }
   0xb   :  { %p583_p3 = scmp.ne.s32.totalorder %s37_s25, %s582_s12  ;;  %p588_p5 = scmp.lt.s32.totalorder %s582_s12, %s582_s12 }
   0xd   :  { %p589_p6 = por %p588_p5, %p587_p4 }
   0xf   :  { %p590_p7 = pnand %p589_p6, %p583_p3 }
  0x11   :  { %593 = shalt.err (!%p590_p7)
}
  0x12   :  { %s668_s13 = smov 64   ;;  %s669_s14 = smov 4  }
  0x13   :  { %42 = dma.hbm_to_vmem [thread:$0]  %s823_s3, 1024, %s37_s25, [#allocation6], %s668_s13, %s668_s13, %s669_s14  }
  0x14   :  { %s594_s19 = scalar_lea.hbm %s821_s1, 1024 }
  0x15   :  { %p595_p8 = scmp.ne.s32.totalorder %s821_s1, %s594_s19  ;;  %p598_p9 = scmp.lt.u32.totalorder %s594_s19, %s821_s1 }
  0x17   :  { %p600_p10 = pnand %p598_p9, %p595_p8 }
  0x19   :  { %603 = shalt.err (!%p600_p10)
}
  0x1a   :  { %s604_s24 = scalar_lea.vmem %s714_s27, 1024  ;;  %p609_p12 = scmp.lt.s32.totalorder %s714_s27, %s714_s27 }
  0x1b   :  { %p605_p11 = scmp.ne.s32.totalorder %s714_s27, %s604_s24  ;;  %p610_p13 = scmp.lt.s32.totalorder %s604_s24, %s604_s24 }
  0x1d   :  { %p611_p0 = por %p610_p13, %p609_p12 }
  0x1f   :  { %p612_p1 = pnand %p611_p0, %p605_p11 }
  0x21   :  { %615 = shalt.err (!%p612_p1)
}
  0x22   :  { %28 = dma.hbm_to_vmem [thread:$0]  %s821_s1, 1024, %s714_s27, [#allocation3], %s668_s13, %s668_s13, %s669_s14  }
  0x23   :  { %s670_s26 = smov [#allocation7]   ;;  %s616_s8 = scalar_lea.hbm %s825_s5, 1024 }
  0x24   :  { %s50_s28 = sshll.u32 %s670_s26, 4  ;;  %p617_p2 = scmp.ne.s32.totalorder %s825_s5, %s616_s8  ;;  %s51_s28 = int_to_ptr.vmem [resolvable:$true] %s50_s28 }
  0x25   :  { %p620_p3 = scmp.lt.u32.totalorder %s616_s8, %s825_s5 }
  0x27   :  { %p622_p4 = pnand %p620_p3, %p617_p2 }
  0x29   :  { %625 = shalt.err (!%p622_p4)
}
  0x2a   :  { %s626_s15 = scalar_lea.vmem %s51_s28, 1024  ;;  %p631_p6 = scmp.lt.s32.totalorder %s51_s28, %s51_s28 }
  0x2b   :  { %p627_p5 = scmp.ne.s32.totalorder %s51_s28, %s626_s15  ;;  %p632_p7 = scmp.lt.s32.totalorder %s626_s15, %s626_s15 }
  0x2d   :  { %p633_p8 = por %p632_p7, %p631_p6 }
  0x2f   :  { %p634_p9 = pnand %p633_p8, %p627_p5 }
  0x31   :  { %637 = shalt.err (!%p634_p9)
}
  0x32   :  { %56 = dma.hbm_to_vmem [thread:$0]  %s825_s5, 1024, %s51_s28, [#allocation6], %s668_s13, %s668_s13, %s669_s14  }
  0x33   :  { %660 = dma.done.wait [#allocation3], 1024  }
  0x34   :  { %661 = vsyncadd [#allocation3], 4294966272 }
  0x35   :  { %662 = dma.done.wait [#allocation6], 2048  }
  0x36   :  { %663 = vsyncadd [#allocation6], 4294965248  ;;  %v671_v0 = vmov 0.0   ;;  %vm672_vm0 = vmmov 0   ;;  %v548_v1 = vld [vmem:[#allocation2] sm:$0xff]   ;;  %v549_v2 = vld [vmem:[#allocation2 + $0x8] sm:$0xff]  }
  0x37   :  { %480 = vmatprep.subr.bf16.mxu0 %v671_v0  ;;  %496 = vmatprep.mubr.msk.bf16.mxu0 %vm672_vm0, %v671_v0  ;;  %v550_v3 = vld [vmem:[#allocation2 + $0x10] sm:$0xff]   ;;  %v556_v4 = vld [vmem:[#allocation5] sm:$0xff]   ;;  %v551_v5 = vld [vmem:[#allocation2 + $0x18] sm:$0xff]   ;;  %s673_s19 = smov [#allocation8]  }
  0x38   :  { %500 = vmatprep.subr.bf16.mxu1 %v671_v0  ;;  %516 = vmatprep.mubr.msk.bf16.mxu1 %vm672_vm0, %v671_v0  ;;  %v557_v6 = vld [vmem:[#allocation5 + $0x8] sm:$0xff]   ;;  %v552_v7 = vld [vmem:[#allocation2 + $0x20] sm:$0xff]   ;;  %v558_v8 = vld [vmem:[#allocation5 + $0x10] sm:$0xff]   ;;  %s416_s20 = sshll.u32 %s673_s19, 4  ;;  %s417_s20 = int_to_ptr.vmem [resolvable:$true] %s416_s20 }
  0x39   :  { %481 = vmatpush3.bf16.msra.mxu0 %v548_v1  ;;  %501 = vmatpush3.bf16.msra.mxu1 %v556_v4  ;;  %v553_v9 = vld [vmem:[#allocation2 + $0x28] sm:$0xff]   ;;  %v559_v10 = vld [vmem:[#allocation5 + $0x18] sm:$0xff]   ;;  %v554_v11 = vld [vmem:[#allocation2 + $0x30] sm:$0xff]   ;;  %p643_p11 = scmp.lt.s32.totalorder %s417_s20, %s417_s20 }
  0x3a   :  { %482 = vmatprep.subr.bf16.mxu0 %v671_v0  ;;  %502 = vmatprep.subr.bf16.mxu1 %v671_v0  ;;  %v560_v12 = vld [vmem:[#allocation5 + $0x20] sm:$0xff]   ;;  %v555_v13 = vld [vmem:[#allocation2 + $0x38] sm:$0xff]   ;;  %v561_v14 = vld [vmem:[#allocation5 + $0x28] sm:$0xff]  }
  0x3b   :  { %v69_v15 = vld [vmem:[%s820_s0] sm:$0xf]  ;;  %v562_v16 = vld [vmem:[#allocation5 + $0x30] sm:$0xff]   ;;  %v563_v17 = vld [vmem:[#allocation5 + $0x38] sm:$0xff]  }
  0x3c   :  { %v564_v18 = vld [vmem:[#allocation7] sm:$0xff]   ;;  %v565_v19 = vld [vmem:[#allocation7 + $0x8] sm:$0xff]   ;;  %v566_v20 = vld [vmem:[#allocation7 + $0x10] sm:$0xff]  }
  0x3d   :  { %483 = vmatpush3.bf16.msra.mxu0 %v549_v2  ;;  %503 = vmatpush3.bf16.msra.mxu1 %v557_v6  ;;  %v567_v21 = vld [vmem:[#allocation7 + $0x18] sm:$0xff]   ;;  %v568_v22 = vld [vmem:[#allocation7 + $0x20] sm:$0xff]   ;;  %v569_v23 = vld [vmem:[#allocation7 + $0x28] sm:$0xff]  }
  0x3e   :  { %484 = vmatprep.subr.bf16.mxu0 %v671_v0  ;;  %504 = vmatprep.subr.bf16.mxu1 %v671_v0  ;;  %v426_v24 = vld [vmem:[%s822_s2] ss:$0 sm:$0xff]  ;;  %v570_v33 = vld [vmem:[#allocation7 + $0x30] sm:$0xff]   ;;  %v571_v34 = vld [vmem:[#allocation7 + $0x38] sm:$0xff]  }
  0x3f   :  { %v435_v35 = vld [vmem:[%s824_s4] ss:$0 sm:$0xff]  ;;  %s638_s4 = scalar_lea.vmem %s417_s20, 128 }
  0x40   :  { %v444_v44 = vld [vmem:[%s826_s6] ss:$0 sm:$0xff]  ;;  %p639_p10 = scmp.ne.s32.totalorder %s417_s20, %s638_s4  ;;  %p644_p12 = scmp.lt.s32.totalorder %s638_s4, %s638_s4 }
  0x41   :  { %485 = vmatpush3.bf16.msra.mxu0 %v550_v3  ;;  %505 = vmatpush3.bf16.msra.mxu1 %v558_v8 }
  0x42   :  { %486 = vmatprep.subr.bf16.mxu0 %v671_v0  ;;  %506 = vmatprep.subr.bf16.mxu1 %v671_v0  ;;  %p645_p13 = por %p644_p12, %p643_p11 }
  0x44   :  { %p646_p0 = pnand %p645_p13, %p639_p10 }
  0x45   :  { %487 = vmatpush3.bf16.msra.mxu0 %v551_v5  ;;  %507 = vmatpush3.bf16.msra.mxu1 %v559_v10 }
  0x46   :  { %488 = vmatprep.subr.bf16.mxu0 %v671_v0  ;;  %508 = vmatprep.subr.bf16.mxu1 %v671_v0 }
  0x49   :  { %489 = vmatpush3.bf16.msra.mxu0 %v552_v7  ;;  %509 = vmatpush3.bf16.msra.mxu1 %v560_v12 }
  0x4a   :  { %490 = vmatprep.subr.bf16.mxu0 %v671_v0  ;;  %510 = vmatprep.subr.bf16.mxu1 %v671_v0 }
  0x4d   :  { %491 = vmatpush3.bf16.msra.mxu0 %v553_v9  ;;  %511 = vmatpush3.bf16.msra.mxu1 %v561_v14 }
  0x4e   :  { %492 = vmatprep.subr.bf16.mxu0 %v671_v0  ;;  %512 = vmatprep.subr.bf16.mxu1 %v671_v0 }
  0x51   :  { %493 = vmatpush3.bf16.msra.mxu0 %v554_v11  ;;  %513 = vmatpush3.bf16.msra.mxu1 %v562_v16 }
  0x52   :  { %494 = vmatprep.subr.bf16.mxu0 %v671_v0  ;;  %514 = vmatprep.subr.bf16.mxu1 %v671_v0 }
  0x55   :  { %495 = vmatpush3.bf16.msra.mxu0 %v555_v13  ;;  %515 = vmatpush3.bf16.msra.mxu1 %v563_v17 }
  0x56   :  { %520 = vmatprep.subr.bf16.mxu0 %v671_v0 }
  0x58   :  { %497 = vmatmul.mubr.bf16.vlgmr.msra.gmra.mrb[0].mxu0 %v69_v15 }
  0x59   :  { %536 = vmatprep.mubr.msk.bf16.mxu0 %vm672_vm0, %v671_v0  ;;  %521 = vmatpush3.bf16.msra.mxu0 %v564_v18 }
  0x5a   :  { %522 = vmatprep.subr.bf16.mxu0 %v671_v0 }
  0x5d   :  { %523 = vmatpush3.bf16.msra.mxu0 %v565_v19 }
  0x5e   :  { %524 = vmatprep.subr.bf16.mxu0 %v671_v0 }
  0x61   :  { %525 = vmatpush3.bf16.msra.mxu0 %v566_v20 }
  0x62   :  { %526 = vmatprep.subr.bf16.mxu0 %v671_v0 }
  0x65   :  { %527 = vmatpush3.bf16.msra.mxu0 %v567_v21 }
  0x66   :  { %528 = vmatprep.subr.bf16.mxu0 %v671_v0 }
  0x69   :  { %529 = vmatpush3.bf16.msra.mxu0 %v568_v22 }
  0x6a   :  { %530 = vmatprep.subr.bf16.mxu0 %v671_v0 }
  0x6d   :  { %531 = vmatpush3.bf16.msra.mxu0 %v569_v23 }
  0x6e   :  { %532 = vmatprep.subr.bf16.mxu0 %v671_v0 }
  0x71   :  { %533 = vmatpush3.bf16.msra.mxu0 %v570_v33 }
  0x72   :  { %534 = vmatprep.subr.bf16.mxu0 %v671_v0 }
  0x75   :  { %535 = vmatpush3.bf16.msra.mxu0 %v571_v34 }
 0x12b   :  { %v175_v25 = vpop.f32.mrb[0].mxu0 }
 0x12c   :  { %v176_v26 = vadd.f32 %v426_v24, %v175_v25  ;;  %v498_v27 = vpop.f32.mrb[1].mxu0 }
 0x12d   :  { %v178_v28 = vpop.f32.mrb[2].mxu0 }
 0x12e   :  { %v181_v29 = vmax.f32 %v176_v26, 0.0  ;;  %v499_v30 = vpop.f32.mrb[3].mxu0 }
 0x130   :  { %v182_v31 = vmin.f32 %v181_v29, 1.0 }
 0x132   :  { %v183_v32 = vpack.c.bf16 %v182_v31, %v182_v31 }
 0x134   :  { %517 = vmatmul.mubr.bf16.vlgmr.msra.gmra.mrb[0].mxu1 %v183_v32 }
 0x207   :  { %v289_v36 = vpop.f32.mrb[0].mxu1 }
 0x208   :  { %v290_v37 = vadd.f32 %v435_v35, %v289_v36  ;;  %v518_v38 = vpop.f32.mrb[1].mxu1 }
 0x209   :  { %v292_v39 = vpop.f32.mrb[2].mxu1 }
 0x20a   :  { %v295_v40 = vmax.f32 %v290_v37, 0.0  ;;  %v519_v41 = vpop.f32.mrb[3].mxu1 }
 0x20c   :  { %v296_v42 = vmin.f32 %v295_v40, 1.0 }
 0x20e   :  { %v297_v43 = vpack.c.bf16 %v296_v42, %v296_v42 }
 0x210   :  { %537 = vmatmul.mubr.bf16.vlgmr.msra.gmra.mrb[4].mxu0 %v297_v43 }
 0x2e3   :  { %v403_v45 = vpop.f32.mrb[4].mxu0 }
 0x2e4   :  { %v404_v46 = vadd.f32 %v444_v44, %v403_v45  ;;  %v538_v47 = vpop.f32.mrb[5].mxu0 }
 0x2e5   :  { %v406_v48 = vpop.f32.mrb[6].mxu0 }
 0x2e6   :  { %409 = vst [vmem:[#allocation8] sm:$0xff] %v404_v46  ;;  %v539_v49 = vpop.f32.mrb[7].mxu0 }
 0x2e7   :  { %649 = shalt.err (!%p646_p0)
}
 0x2e8   :  { %s650_s6 = scalar_lea.hbm %s827_s7, 128 }
 0x2e9   :  { %p651_p1 = scmp.ne.s32.totalorder %s827_s7, %s650_s6  ;;  %p654_p2 = scmp.lt.u32.totalorder %s650_s6, %s827_s7 }
 0x2eb   :  { %p656_p3 = pnand %p654_p2, %p651_p1 }
 0x2ed   :  { %659 = shalt.err (!%p656_p3)
}
 0x2ee   :  { %419 = dma.vmem_to_hbm [thread:$0]  %s417_s20, 128, %s827_s7, [#allocation4]  }
 0x2ef   :  { %664 = dma.done.wait [#allocation4], 128  }
 0x2f0   :  { %665 = vsyncadd [#allocation4], 4294967168 }
 0x2f1   :  { %423 = vsyncpa [#allocation3], 1 }
 0x2f2   :  { %424 = vsyncpa [#allocation6], 1 }
 0x2f3   :  { %425 = vsyncpa [#allocation4], 1 }

</bundles_post_ra>
